<compile_context>
chip_gen: v7x
topology: tpu7x:2x2x1
jax: 0.10.0
libtpu: 0.0.40
codegen_flags: <defaults>
</compile_context>

<pallas_src>
import math
import functools

import jax
import jax.numpy as jnp
from jax.experimental import pallas as pl
from jax.experimental.pallas import tpu as pltpu


# ----------------------------- kernel 1: QKV projection ---------------------

def _qkv_proj_kernel(x_ref, w_ref, b_ref, o_ref):
    # x: [ts, D], w: [D, 3D] (resident), b: [1, 3D] f32  ->  o: [ts, 3D] lane-dense
    acc = jnp.dot(x_ref[...], w_ref[...], preferred_element_type=jnp.float32)
    o_ref[...] = (acc + b_ref[...]).astype(o_ref.dtype)


# ------------------- kernel 2: flash attention + fused out-proj -------------

def _flash_attn_proj_kernel(kv_lo_ref, kv_hi_ref,            # scalar prefetch (SMEM)
                            q_ref, k_ref, v_ref,              # [tq,hd], [tkv,hd], [tkv,hd]
                            qs_ref, qe_ref,                    # [tq,1] int32 seg start/end
                            wp_ref, bp_ref,                    # [hd,D], [1,D]
                            o_ref,                             # [tq,D]
                            m_sc, l_sc, acc_sc, proj_sc,
                            *, tkv):
    qi = pl.program_id(0)
    h = pl.program_id(1)
    kv = pl.program_id(2)
    n_heads = pl.num_programs(1)
    n_kv = pl.num_programs(2)

    # proj_sc accumulates over the HEAD axis -> that axis must execute
    # sequentially ("arbitrary").  Never mark it parallel/core_parallel.
    @pl.when(jnp.logical_and(h == 0, kv == 0))
    def _init_proj():
        proj_sc[...] = jnp.zeros_like(proj_sc)

    @pl.when(kv == 0)
    def _init_softmax():
        m_sc[...] = jnp.full_like(m_sc, -jnp.inf)
        l_sc[...] = jnp.zeros_like(l_sc)
        acc_sc[...] = jnp.zeros_like(acc_sc)

    # Block-diagonal sparsity: only kv tiles in [kv_lo, kv_hi] intersect any
    # segment touched by this q tile.  Skipped steps do no MXU/EUP work, and
    # the clamped index_map means they issue no new K/V DMA either.
    in_range = jnp.logical_and(kv >= kv_lo_ref[qi], kv <= kv_hi_ref[qi])

    @pl.when(in_range)
    def _online_softmax_update():
        # RoPE and 1/sqrt(hd) are already folded into q/k outside the kernel.
        # scores[i, j] = q[i, :] . k[j, :]     (q @ k.T without a transpose)
        s = jax.lax.dot_general(q_ref[...], k_ref[...],
                                (((1,), (1,)), ((), ())),
                                preferred_element_type=jnp.float32)

        # Mask rebuilt from per-row segment [start, end) vs key column ids.
        col = kv * tkv + jax.lax.broadcasted_iota(jnp.int32, s.shape, 1)
        mask = jnp.logical_and(col >= qs_ref[...], col < qe_ref[...])
        s = jnp.where(mask, s, -1e30)

        m_prev = m_sc[...]
        m_new = jnp.maximum(m_prev, jnp.max(s, axis=-1, keepdims=True))
        alpha = jnp.exp(m_prev - m_new)
        p = jnp.exp(s - m_new)
        p = jnp.where(mask, p, 0.0)          # robust even for fully-masked rows
        l_sc[...] = alpha * l_sc[...] + jnp.sum(p, axis=-1, keepdims=True)
        acc_sc[...] = alpha * acc_sc[...] + jnp.dot(
            p.astype(v_ref.dtype), v_ref[...], preferred_element_type=jnp.float32)
        m_sc[...] = m_new

    @pl.when(kv == n_kv - 1)
    def _reduce_head_into_proj():
        l = l_sc[...]
        inv_l = pl.reciprocal(l, approx=True)
        inv_l = inv_l * (2.0 - l * inv_l)             # one Newton refinement step
        o_h = acc_sc[...] * inv_l                     # [tq, hd]
        # Fused output projection: out += o_h @ w_proj[h*hd:(h+1)*hd, :]
        proj_sc[...] += jnp.dot(o_h.astype(wp_ref.dtype), wp_ref[...],
                                preferred_element_type=jnp.float32)

    @pl.when(jnp.logical_and(kv == n_kv - 1, h == n_heads - 1))
    def _finalize():
        o_ref[...] = (proj_sc[...] + bp_ref[...]).astype(o_ref.dtype)


# ----------------------------------- wrapper --------------------------------

def _round_up(x, m):
    return ((x + m - 1) // m) * m


def _choose_tile(size, pref):
    # Prefer `pref`; short sequences use one 8-aligned (padded) tile.  We never
    # fall back to a single un-pipelined [S,S] tile for large non-divisible S.
    return pref if size > pref else max(8, _round_up(size, 8))


def vision_sdpa_attention(hidden_states, rotary_pos_emb, cu_seqlens,
                          w_qkv, b_qkv, w_proj, b_proj, num_heads,
                          *, q_tile=256, kv_tile=256, s_tile=256):
    """hidden_states: [S, D]; weights stored [in, out] (y = x @ W + b)."""
    S, D = hidden_states.shape
    H = num_heads
    hd = D // H
    dtype = hidden_states.dtype

    tq = _choose_tile(S, q_tile)
    tkv = _choose_tile(S, kv_tile)
    ts = _choose_tile(S, s_tile)
    S_pad = _round_up(S, math.lcm(tq, tkv, ts))
    n_q = S_pad // tq
    n_kv = S_pad // tkv

    # NOTE: in a real model these casts/reshapes should be done once at weight
    # load time, not per forward call (avoids a recurring XLA convert pass).
    w_qkv = w_qkv.astype(dtype)
    b_qkv2 = b_qkv.reshape(1, 3 * D).astype(jnp.float32)
    wp = w_proj.reshape(H, hd, D).astype(dtype)
    bp = b_proj.reshape(1, D).astype(jnp.float32)

    x = hidden_states
    if S_pad != S:
        x = jnp.pad(x, ((0, S_pad - S), (0, 0)))

    # ---- kernel 1: one wide, lane-dense QKV projection ([S,D] @ [D,3D] + b) ----
    qkv = pl.pallas_call(
        _qkv_proj_kernel,
        out_shape=jax.ShapeDtypeStruct((S_pad, 3 * D), dtype),
        grid=(S_pad // ts,),
        in_specs=[
            pl.BlockSpec((ts, D), lambda i: (i, 0)),
            pl.BlockSpec((D, 3 * D), lambda i: (0, 0)),      # weight resident
            pl.BlockSpec((1, 3 * D), lambda i: (0, 0)),
        ],
        out_specs=pl.BlockSpec((ts, 3 * D), lambda i: (i, 0)),
        compiler_params=pltpu.CompilerParams(
            dimension_semantics=("parallel",),
            vmem_limit_bytes=48 * 1024 * 1024),
    )(x, w_qkv, b_qkv2)
    # TODO(synk): for very large D the resident [D,3D] weight should be tiled
    # along the 3D output dim with an extra grid axis (v7x has only 64 MiB VMEM).

    # ---- glue (XLA): single transpose to [3,H,S,hd], RoPE + 1/sqrt(hd) applied
    # once here (head-invariant) so nothing is recomputed inside the kv loop. ----
    qkv_t = jnp.transpose(qkv.reshape(S_pad, 3, H, hd), (1, 2, 0, 3))

    ang = jnp.concatenate([rotary_pos_emb, rotary_pos_emb], axis=-1)   # [S, hd]
    if S_pad != S:
        ang = jnp.pad(ang, ((0, S_pad - S), (0, 0)))
    cos = jnp.cos(ang)[None, :, :].astype(jnp.float32)                 # [1, S_pad, hd]
    sin = jnp.sin(ang)[None, :, :].astype(jnp.float32)

    def _rope(t):          # t: [H, S_pad, hd] (f32)
        t1 = t[..., : hd // 2]
        t2 = t[..., hd // 2:]
        rot = jnp.concatenate([-t2, t1], axis=-1)
        return t * cos + rot * sin

    scale = 1.0 / math.sqrt(hd)
    q = (_rope(qkv_t[0].astype(jnp.float32)) * scale).astype(dtype)    # [H, S_pad, hd]
    k = _rope(qkv_t[1].astype(jnp.float32)).astype(dtype)
    v = qkv_t[2]

    # ---- glue: per-token segment [start, end) and per-q-tile kv-tile ranges ----
    cu = jnp.asarray(cu_seqlens, dtype=jnp.int32)
    n_seg = int(cu.shape[0]) - 1
    ids = jnp.arange(S_pad, dtype=jnp.int32)
    seg_idx = jnp.clip(jnp.sum(ids[:, None] >= cu[None, 1:], axis=1), 0, n_seg - 1)
    seg_start = jnp.where(ids < S, cu[:-1][seg_idx], S).astype(jnp.int32)
    seg_end = jnp.where(ids < S, cu[1:][seg_idx], S_pad).astype(jnp.int32)

    kv_lo = (jnp.min(seg_start.reshape(n_q, tq), axis=1) // tkv).astype(jnp.int32)
    kv_hi = ((jnp.max(seg_end.reshape(n_q, tq), axis=1) - 1) // tkv).astype(jnp.int32)

    seg_start_col = seg_start.reshape(S_pad, 1)
    seg_end_col = seg_end.reshape(S_pad, 1)

    def _kv_index(qi, h, kv, lo_ref, hi_ref):
        # Clamp out-of-range steps onto the boundary block: same block index as
        # the adjacent in-range step, so Pallas skips the redundant DMA.
        return (h, jnp.clip(kv, lo_ref[qi], hi_ref[qi]), 0)

    out = pl.pallas_call(
        functools.partial(_flash_attn_proj_kernel, tkv=tkv),
        out_shape=jax.ShapeDtypeStruct((S_pad, D), dtype),
        grid_spec=pltpu.PrefetchScalarGridSpec(
            num_scalar_prefetch=2,
            grid=(n_q, H, n_kv),
            in_specs=[
                pl.BlockSpec((None, tq, hd), lambda qi, h, kv, lo, hi: (h, qi, 0)),   # q
                pl.BlockSpec((None, tkv, hd), _kv_index),                             # k
                pl.BlockSpec((None, tkv, hd), _kv_index),                             # v
                pl.BlockSpec((tq, 1), lambda qi, h, kv, lo, hi: (qi, 0)),             # seg start
                pl.BlockSpec((tq, 1), lambda qi, h, kv, lo, hi: (qi, 0)),             # seg end
                pl.BlockSpec((None, hd, D), lambda qi, h, kv, lo, hi: (h, 0, 0)),     # w_proj[h]
                pl.BlockSpec((1, D), lambda qi, h, kv, lo, hi: (0, 0)),               # b_proj
            ],
            out_specs=pl.BlockSpec((tq, D), lambda qi, h, kv, lo, hi: (qi, 0)),
            scratch_shapes=[
                pltpu.VMEM((tq, 1), jnp.float32),     # m (running max)
                pltpu.VMEM((tq, 1), jnp.float32),     # l (running denom)
                pltpu.VMEM((tq, hd), jnp.float32),    # per-head unnormalized accumulator
                pltpu.VMEM((tq, D), jnp.float32),     # fused output-projection accumulator
            ]),
        compiler_params=pltpu.CompilerParams(
            # head & kv axes reduce into VMEM scratch -> must stay sequential;
            # the q-tile axis shards across TensorCores (v7x megacore).
            dimension_semantics=("parallel", "arbitrary", "arbitrary"),
            vmem_limit_bytes=48 * 1024 * 1024),
    )(kv_lo, kv_hi, q, k, v, seg_start_col, seg_end_col, wp, bp)

    return out[:S] if S_pad != S else out


# --------------------------------- reference ---------------------------------

def _reference(hidden_states, rotary_pos_emb, cu_seqlens,
               w_qkv, b_qkv, w_proj, b_proj, H):
    S, D = hidden_states.shape
    hd = D // H
    qkv = (hidden_states @ w_qkv + b_qkv).reshape(S, 3, H, hd)
    q, k, v = qkv[:, 0], qkv[:, 1], qkv[:, 2]
    ang = jnp.concatenate([rotary_pos_emb, rotary_pos_emb], -1)
    cos = jnp.cos(ang)[:, None, :]
    sin = jnp.sin(ang)[:, None, :]

    def rot(t):
        return jnp.concatenate([-t[..., hd // 2:], t[..., : hd // 2]], -1)

    q = q * cos + rot(q) * sin
    k = k * cos + rot(k) * sin
    ids = jnp.arange(S)
    allowed = jnp.zeros((S, S), bool)
    for i in range(1, len(cu_seqlens)):
        segm = (ids >= int(cu_seqlens[i - 1])) & (ids < int(cu_seqlens[i]))
        allowed = allowed | (segm[:, None] & segm[None, :])
    s = jnp.einsum('qhd,khd->hqk', q, k) / math.sqrt(hd)
    s = jnp.where(allowed[None], s, -jnp.inf)
    p = jax.nn.softmax(s, axis=-1)
    o = jnp.einsum('hqk,khd->qhd', p, v).reshape(S, D)
    return o @ w_proj + b_proj


if __name__ == "__main__":
    key = jax.random.PRNGKey(0)
    S, D, H = 16, 32, 4            # seq_length, dim, num_heads
    hd = D // H
    k1, k2, k3, k4, k5, k6 = jax.random.split(key, 6)
    x = jax.random.normal(k1, (S, D), jnp.float32)
    rotary = jax.random.normal(k2, (S, hd // 2), jnp.float32)
    w_qkv = jax.random.normal(k3, (D, 3 * D), jnp.float32) * 0.05
    b_qkv = jax.random.normal(k4, (3 * D,), jnp.float32) * 0.05
    w_proj = jax.random.normal(k5, (D, D), jnp.float32) * 0.05
    b_proj = jax.random.normal(k6, (D,), jnp.float32) * 0.05
    cu_seqlens = [0, 6, 16]        # two variable-length vision segments

    out = vision_sdpa_attention(x, rotary, cu_seqlens,
                                w_qkv, b_qkv, w_proj, b_proj, H)
    out = jax.block_until_ready(out)

    ref = _reference(x, rotary, cu_seqlens, w_qkv, b_qkv, w_proj, b_proj, H)
    err = float(jnp.max(jnp.abs(out - ref)))
    assert jnp.allclose(out, ref, atol=2e-3, rtol=2e-3), err
    print("KERNEL_OK")
</pallas_src>

<mosaic_0001>
module attributes {stable_mosaic.version = 11 : i64} {
  func.func @_qkv_proj_kernel(%arg0: i32, %arg1: memref<16x32xf32, #tpu.memory_space<vmem>>, %arg2: memref<32x96xf32, #tpu.memory_space<vmem>>, %arg3: memref<1x96xf32, #tpu.memory_space<vmem>>, %arg4: memref<16x96xf32, #tpu.memory_space<vmem>>) attributes {dimension_semantics = [#tpu.dimension_semantics<parallel>], iteration_bounds = array<i64: 1>, scalar_prefetch = 0 : i64, scratch_operands = 0 : i64, tpu.core_type = #tpu.core_type<tc>, window_params = [{transform_indices = @transform_0, window_bounds = array<i64: 16, 32>}, {pipeline_mode = #tpu.pipeline_mode<synchronous>, transform_indices = @transform_1, window_bounds = array<i64: 32, 96>}, {pipeline_mode = #tpu.pipeline_mode<synchronous>, transform_indices = @transform_2, window_bounds = array<i64: 1, 96>}, {transform_indices = @transform_3, window_bounds = array<i64: 16, 96>}]} {
    %c0 = arith.constant 0 : index
    %c0_0 = arith.constant 0 : index
    %0 = vector.load %arg1[%c0, %c0_0] : memref<16x32xf32, #tpu.memory_space<vmem>>, vector<16x32xf32>
    %c0_1 = arith.constant 0 : index
    %c0_2 = arith.constant 0 : index
    %1 = vector.load %arg2[%c0_1, %c0_2] : memref<32x96xf32, #tpu.memory_space<vmem>>, vector<32x96xf32>
    %cst = arith.constant dense<0.000000e+00> : vector<16x96xf32>
    %2 = tpu.matmul %0, %1, %cst {dimension_numbers = #tpu.dot_dimension_numbers<[1], [0], [0], [1], [0, 0, 1, 1], [], []>} : vector<16x32xf32>, vector<32x96xf32>, vector<16x96xf32> -> vector<16x96xf32>
    %c0_3 = arith.constant 0 : index
    %c0_4 = arith.constant 0 : index
    %3 = vector.load %arg3[%c0_3, %c0_4] : memref<1x96xf32, #tpu.memory_space<vmem>>, vector<1x96xf32>
    %4 = vector.broadcast %3 : vector<1x96xf32> to vector<16x96xf32>
    %5 = arith.addf %2, %4 : vector<16x96xf32>
    %c0_5 = arith.constant 0 : index
    %c0_6 = arith.constant 0 : index
    %6 = vector.load %arg4[%c0_5, %c0_6] : memref<16x96xf32, #tpu.memory_space<vmem>>, vector<16x96xf32>
    tpu.vector_store %arg4[%c0_5, %c0_6], %5 {strides = array<i32>} : memref<16x96xf32, #tpu.memory_space<vmem>>, vector<16x96xf32>,
    return
  }
  func.func @transform_0(%arg0: i32) -> (i32, i32) {
    %c0_i32 = arith.constant 0 : i32
    %c0_i32_0 = arith.constant 0 : i32
    return %arg0, %c0_i32 : i32, i32
  }
  func.func @transform_1(%arg0: i32) -> (i32, i32) {
    %c0_i32 = arith.constant 0 : i32
    %c0_i32_0 = arith.constant 0 : i32
    %c0_i32_1 = arith.constant 0 : i32
    return %c0_i32, %c0_i32_0 : i32, i32
  }
  func.func @transform_2(%arg0: i32) -> (i32, i32) {
    %c0_i32 = arith.constant 0 : i32
    %c0_i32_0 = arith.constant 0 : i32
    %c0_i32_1 = arith.constant 0 : i32
    return %c0_i32, %c0_i32_0 : i32, i32
  }
  func.func @transform_3(%arg0: i32) -> (i32, i32) {
    %c0_i32 = arith.constant 0 : i32
    %c0_i32_0 = arith.constant 0 : i32
    return %arg0, %c0_i32 : i32, i32
  }
}

</mosaic_0001>

<bundles_post_ra>
// kernel: tpu_custom_call.1
= control target key start
LH: loop header
LB: loop body
LE: loop exit
PB: predicated region body
PF: predicated region fallthrough
CT: control target
= control target key end

     0   :  { %8 = vsyncpa [#allocation3], 0  ;;  %s337_s0 = inlined_call_operand.hbm [shape: f32[16,32], index: 0, kind: input, shape index: {}]   ;;  %s338_s1 = inlined_call_operand.hbm [shape: f32[32,96], index: 1, kind: input, shape index: {}]   ;;  %s339_s2 = inlined_call_operand.vmem [shape: f32[1,96], index: 2, kind: input, shape index: {}]   ;;  %s340_s3 = inlined_call_operand.hbm [shape: f32[16,96], index: 3, kind: output, shape index: {}]  }
   0x1   :  { %9 = vsyncpa [#allocation6], 0 }
   0x2   :  { %10 = vsyncpa [#allocation4], 0  ;;  %s264_s12 = smov [#allocation2]   ;;  %s192_s16 = scalar_lea.hbm %s337_s0, 256 }
   0x3   :  { %s16_s13 = sshll.u32 %s264_s12, 4  ;;  %p193_p0 = scmp.ne.s32.totalorder %s337_s0, %s192_s16  ;;  %s17_s13 = int_to_ptr.vmem [resolvable:$true] %s16_s13 }
   0x4   :  { %p196_p1 = scmp.lt.u32.totalorder %s192_s16, %s337_s0 }
   0x6   :  { %p198_p2 = pnand %p196_p1, %p193_p0 }
   0x8   :  { %201 = shalt.err (!%p198_p2)
}
   0x9   :  { %s202_s21 = scalar_lea.vmem %s17_s13, 256  ;;  %p207_p4 = scmp.lt.s32.totalorder %s17_s13, %s17_s13 }
   0xa   :  { %p203_p3 = scmp.ne.s32.totalorder %s17_s13, %s202_s21  ;;  %p208_p5 = scmp.lt.s32.totalorder %s202_s21, %s202_s21 }
   0xc   :  { %p209_p6 = por %p208_p5, %p207_p4 }
   0xe   :  { %p210_p7 = pnand %p209_p6, %p203_p3 }
  0x10   :  { %213 = shalt.err (!%p210_p7)
}
  0x11   :  { %s265_s22 = smov 128   ;;  %s266_s23 = smov 8  }
  0x12   :  { %22 = dma.hbm_to_vmem [thread:$0]  %s337_s0, 256, %s17_s13, [#allocation3], %s265_s22, %s265_s22, %s266_s23  }
  0x13   :  { %s267_s26 = smov [#allocation5]   ;;  %s214_s30 = scalar_lea.hbm %s338_s1, 512 }
  0x14   :  { %s28_s27 = sshll.u32 %s267_s26, 4  ;;  %p215_p8 = scmp.ne.s32.totalorder %s338_s1, %s214_s30  ;;  %s29_s27 = int_to_ptr.vmem [resolvable:$true] %s28_s27 }
  0x15   :  { %p218_p9 = scmp.lt.u32.totalorder %s214_s30, %s338_s1 }
  0x17   :  { %p220_p10 = pnand %p218_p9, %p215_p8 }
  0x19   :  { %223 = shalt.err (!%p220_p10)
}
  0x1a   :  { %s224_s8 = scalar_lea.vmem %s29_s27, 512  ;;  %p229_p12 = scmp.lt.s32.totalorder %s29_s27, %s29_s27 }
  0x1b   :  { %p225_p11 = scmp.ne.s32.totalorder %s29_s27, %s224_s8  ;;  %p230_p13 = scmp.lt.s32.totalorder %s224_s8, %s224_s8 }
  0x1d   :  { %p231_p0 = por %p230_p13, %p229_p12 }
  0x1f   :  { %p232_p1 = pnand %p231_p0, %p225_p11 }
  0x21   :  { %235 = shalt.err (!%p232_p1)
}
  0x22   :  { %34 = dma.hbm_to_vmem [thread:$0]  %s338_s1, 512, %s29_s27, [#allocation6], %s265_s22, %s265_s22, %s266_s23  }
  0x23   :  { %258 = dma.done.wait [#allocation3], 256  }
  0x24   :  { %259 = vsyncadd [#allocation3], 4294967040 }
  0x25   :  { %260 = dma.done.wait [#allocation6], 512  }
  0x26   :  { %261 = vsyncadd [#allocation6], 4294966784  ;;  %vm56_vm0 = vcmask 261120   ;;  %v45_v0 = vld [vmem:[#allocation5] sm:$0xff]  ;;  %v46_v1 = vld [vmem:[#allocation5 + $0x8] sm:$0xff]  ;;  %s268_s11 = smov [#allocation7]  }
  0x27   :  { %v47_v2 = vld [vmem:[#allocation5 + $0x10] sm:$0xff]  ;;  %v179_v3 = vpack.c.bf16 %v46_v1, %v45_v0  ;;  %v48_v4 = vld [vmem:[#allocation5 + $0x18] sm:$0xff]  ;;  %s146_s12 = sshll.u32 %s268_s11, 4  ;;  %vm138_vm1 = vcmask 785408   ;;  %s147_s12 = int_to_ptr.vmem [resolvable:$true] %s146_s12 }
  0x28   :  { %v43_v5 = vld [vmem:[#allocation2] sm:$0xff]  ;;  %v183_v6 = vpack.c.bf16 %v48_v4, %v47_v2  ;;  %v44_v7 = vld [vmem:[#allocation2 + $0x8] sm:$0xff]  ;;  %s236_s13 = scalar_lea.vmem %s147_s12, 256  ;;  %p241_p3 = scmp.lt.s32.totalorder %s147_s12, %s147_s12 }
  0x29   :  { %176 = vmatprep.mubr.msk.f32.mxu0 %vm56_vm0, %v43_v5  ;;  %180 = vmatprep.subr.bf16.mxu0 %v179_v3  ;;  %v159_v8 = vld [vmem:[%s339_s2] ss:$0 sm:$0xff]  ;;  %p237_p2 = scmp.ne.s32.totalorder %s147_s12, %s236_s13  ;;  %p242_p4 = scmp.lt.s32.totalorder %s236_s13, %s236_s13 }
  0x2a   :  { %182 = vmatpush3.bf16.msra.mxu0 %v179_v3 }
  0x2b   :  { %184 = vmatprep.subr.bf16.mxu0 %v183_v6  ;;  %p243_p5 = por %p242_p4, %p241_p3 }
  0x2d   :  { %p244_p6 = pnand %p243_p5, %p237_p2 }
  0x2e   :  { %186 = vmatpush3.bf16.msra.mxu0 %v183_v6 }
  0x31   :  { %177 = vmatmul.mubr.msk.f32.vlgmr.msra.gmra.mrb[0].mxu0 %vm56_vm0, %v44_v7 }
 0x104   :  { %v178_v9 = vpop.f32.mrb[0].mxu0 }
 0x105   :  { %v135_v10 = vadd.f32 %v178_v9, %v159_v8  ;;  %v129_v11 = vpop.f32.mrb[1].mxu0 }
 0x106   :  { %v130_v12 = vadd.f32 %v159_v8, %v129_v11 }
 0x107   :  { %140 = vst.msk [vmem:[#allocation7 + $0x8] sm:$0xff] %vm138_vm1, %v135_v10 }
 0x108   :  { %139 = vst.msk [vmem:[#allocation7] sm:$0xff] %vm138_vm1, %v130_v12 }
 0x109   :  { %247 = shalt.err (!%p244_p6)
}
 0x10a   :  { %s248_s2 = scalar_lea.hbm %s340_s3, 256 }
 0x10b   :  { %p249_p7 = scmp.ne.s32.totalorder %s340_s3, %s248_s2  ;;  %p252_p8 = scmp.lt.u32.totalorder %s248_s2, %s340_s3 }
 0x10d   :  { %p254_p9 = pnand %p252_p8, %p249_p7 }
 0x10f   :  { %257 = shalt.err (!%p254_p9)
}
 0x110   :  { %152 = dma.vmem_to_hbm [thread:$0]  %s147_s12, 256, %s340_s3, [#allocation4], %s265_s22, %s265_s22, %s266_s23  }
 0x111   :  { %262 = dma.done.wait [#allocation4], 256  }
 0x112   :  { %263 = vsyncadd [#allocation4], 4294967040 }
 0x113   :  { %156 = vsyncpa [#allocation3], 1 }
 0x114   :  { %157 = vsyncpa [#allocation6], 1 }
 0x115   :  { %158 = vsyncpa [#allocation4], 1 }

</bundles_post_ra>
